<compile_context>
chip_gen: v6e
topology: v6e:2x2x1
jax: 0.10.0
libtpu: 0.0.40
codegen_flags: <defaults>
</compile_context>

<pallas_src>
import math

import jax
import jax.numpy as jnp
from jax.experimental import pallas as pl
from jax.experimental.pallas import tpu as pltpu

t_len = 100   # hardcoded in the reference module
s_len = 32    # input feature dim (global in the original script)

_SINGLE_BLOCK_MAX_ROWS = 1024   # below this, one full-array block (no tiling)


def nencoder_kernel(x_ref, w_ref, bias_ref, o_ref):
    # x_ref:    (tm, Kp)   lane-packed rows (Kp = pack * s_len), native dtype
    # w_ref:    (Kp, Np)   block-diagonal weight kron(I_pack, W1^T), f32
    # bias_ref: (1, Np)    fused bias (bias1 + b1.weight), tiled `pack` times
    # o_ref:    (tm, Np)   output in the input's dtype
    x = x_ref[...].astype(jnp.float32)                       # cast rides the VPU
    acc = jnp.dot(x, w_ref[...], preferred_element_type=jnp.float32)
    o_ref[...] = jnp.tanh(acc + bias_ref[...]).astype(o_ref.dtype)


def _pack_factor(output_dim):
    """Rows packed per 128-lane row.  Must divide t_len so it divides M=B*t_len
    for every batch size (-> never needs row padding)."""
    if output_dim <= 128 and 128 % output_dim == 0:
        return max(1, math.gcd(128 // output_dim, t_len))
    # NOTE: output_dim not dividing 128 -> pack=1 -> Np < 128 -> masked stores.
    # Still correct, just loses the lane-dense-store benefit (perf cliff).
    return 1


def prepare_nencoder_params(w1, bias1, b1_weight, output_dim):
    """One-time parameter preparation (hoisted out of the per-call hot path)."""
    pack = _pack_factor(output_dim)
    bias_fused = (bias1 + b1_weight[0]).astype(jnp.float32)            # (D,)
    # Block-diagonal weight: kron(I_pack, W1^T) -> (pack*s_len, pack*D).
    w_bd = jnp.kron(jnp.eye(pack, dtype=jnp.float32),
                    w1.T.astype(jnp.float32))
    bias_p = jnp.tile(bias_fused, pack).reshape(1, pack * output_dim)
    w_bd, bias_p = jax.block_until_ready((w_bd, bias_p))
    return {"w_bd": w_bd, "bias_p": bias_p,
            "pack": pack, "output_dim": output_dim}


def nencoder_forward(x, params, *, tm=4096):
    """x: (B, t_len*s_len); params from prepare_nencoder_params.
    Returns (B, t_len, output_dim) in x.dtype."""
    output_dim = params["output_dim"]
    pack = params["pack"]
    w_bd = params["w_bd"]
    bias_p = params["bias_p"]

    B = x.shape[0]
    assert x.shape[1] == t_len * s_len
    M = B * t_len
    assert M % pack == 0, "pack divides t_len, so it must divide M"
    Mp = M // pack                      # packed rows
    Kp = pack * s_len
    Np = pack * output_dim

    # Pure reshape: no copy, no dtype change, no padding.
    hp = x.reshape(Mp, Kp)

    if Mp <= _SINGLE_BLOCK_MAX_ROWS:
        # Single full-array block: exempt from the (8,128) divisibility rule,
        # out_shape is exactly what is returned, zero wrapper overhead.
        tm_eff = Mp
        grid = (1,)
    else:
        # >=2 grid steps so v7x's two TensorCores both get work; rows per step
        # are a sublane multiple (8) capped at `tm`.  A ragged last tile is
        # handled by Pallas (OOB reads unspecified, OOB stores masked) — the
        # row blocks are independent, so that is exact.
        half = (Mp + 1) // 2
        tm_eff = max(8, min(tm, ((half + 7) // 8) * 8))
        grid = (pl.cdiv(Mp, tm_eff),)

    itemsize = jnp.dtype(x.dtype).itemsize
    cost = pl.CostEstimate(
        flops=2 * M * s_len * output_dim,
        transcendentals=M * output_dim,
        bytes_accessed=(Mp * Kp + Mp * Np) * itemsize
                       + (w_bd.size + bias_p.size) * 4,
    )

    out = pl.pallas_call(
        nencoder_kernel,
        out_shape=jax.ShapeDtypeStruct((Mp, Np), x.dtype),
        grid_spec=pltpu.PrefetchScalarGridSpec(
            num_scalar_prefetch=0,
            grid=grid,
            in_specs=[
                pl.BlockSpec((tm_eff, Kp), lambda i: (i, 0)),
                pl.BlockSpec((Kp, Np), lambda i: (0, 0)),   # weight resident
                pl.BlockSpec((1, Np), lambda i: (0, 0)),    # bias resident
            ],
            out_specs=pl.BlockSpec((tm_eff, Np), lambda i: (i, 0)),
        ),
        compiler_params=pltpu.CompilerParams(
            dimension_semantics=("parallel",),
            vmem_limit_bytes=32 * 1024 * 1024,   # safe on v5e/v6e/v7x
        ),
        cost_estimate=cost,
    )(hp, w_bd, bias_p)

    # (Mp, Np) is a contiguous re-interpretation of (B, t_len, output_dim).
    return out.reshape(B, t_len, output_dim)


if __name__ == "__main__":
    output_dim = 32

    key = jax.random.PRNGKey(0)
    k_x, k_w, k_b, k_x2 = jax.random.split(key, 4)

    # Deterministic parameter init mirroring the module's __init__:
    #   xavier_normal_ for L1.weight, default uniform for L1.bias,
    #   b1.weight filled with 0.
    xavier_std = (2.0 / (s_len + output_dim)) ** 0.5
    w1 = xavier_std * jax.random.normal(k_w, (output_dim, s_len), jnp.float32)
    bound = 1.0 / (s_len ** 0.5)
    bias1 = jax.random.uniform(k_b, (output_dim,), jnp.float32, -bound, bound)
    b1_weight = jnp.zeros((1, output_dim), jnp.float32)

    # Constants built exactly once (hot path is a single pallas_call).
    params = prepare_nencoder_params(w1, bias1, b1_weight, output_dim)

    def reference(x):
        h = x.reshape(-1, t_len, s_len)
        return jnp.tanh(jnp.einsum("btk,ok->bto", h, w1) + bias1 + b1_weight[0])

    # Small batch -> single full-block fast path.
    x = jax.random.normal(k_x, (2, t_len * s_len), jnp.float32)
    z = jax.block_until_ready(nencoder_forward(x, params))
    assert z.shape == (2, t_len, output_dim)
    assert jnp.allclose(z, reference(x), atol=2e-5, rtol=2e-5)

    # Larger batch -> 2-step parallel grid with a ragged (masked) last tile.
    x2 = jax.random.normal(k_x2, (41, t_len * s_len), jnp.float32)
    z2 = jax.block_until_ready(nencoder_forward(x2, params))
    assert z2.shape == (41, t_len, output_dim)
    assert jnp.allclose(z2, reference(x2), atol=2e-5, rtol=2e-5)

    print("KERNEL_OK")
</pallas_src>

<mosaic_0001>
module attributes {stable_mosaic.version = 11 : i64} {
  func.func @nencoder_kernel(%arg0: i32, %arg1: memref<50x128xf32, #tpu.memory_space<vmem>>, %arg2: memref<128x128xf32, #tpu.memory_space<vmem>>, %arg3: memref<1x128xf32, #tpu.memory_space<vmem>>, %arg4: memref<50x128xf32, #tpu.memory_space<vmem>>) attributes {dimension_semantics = [#tpu.dimension_semantics<parallel>], iteration_bounds = array<i64: 1>, scalar_prefetch = 0 : i64, scratch_operands = 0 : i64, tpu.core_type = #tpu.core_type<tc>, window_params = [{transform_indices = @transform_0, window_bounds = array<i64: 50, 128>}, {pipeline_mode = #tpu.pipeline_mode<synchronous>, transform_indices = @transform_1, window_bounds = array<i64: 128, 128>}, {pipeline_mode = #tpu.pipeline_mode<synchronous>, transform_indices = @transform_2, window_bounds = array<i64: 1, 128>}, {transform_indices = @transform_3, window_bounds = array<i64: 50, 128>}]} {
    %c0 = arith.constant 0 : index
    %c0_0 = arith.constant 0 : index
    %0 = vector.load %arg1[%c0, %c0_0] : memref<50x128xf32, #tpu.memory_space<vmem>>, vector<50x128xf32>
    %c0_1 = arith.constant 0 : index
    %c0_2 = arith.constant 0 : index
    %1 = vector.load %arg2[%c0_1, %c0_2] : memref<128x128xf32, #tpu.memory_space<vmem>>, vector<128x128xf32>
    %cst = arith.constant dense<0.000000e+00> : vector<50x128xf32>
    %2 = tpu.matmul %0, %1, %cst {dimension_numbers = #tpu.dot_dimension_numbers<[1], [0], [0], [1], [0, 0, 1, 1], [], []>} : vector<50x128xf32>, vector<128x128xf32>, vector<50x128xf32> -> vector<50x128xf32>
    %c0_3 = arith.constant 0 : index
    %c0_4 = arith.constant 0 : index
    %3 = vector.load %arg3[%c0_3, %c0_4] : memref<1x128xf32, #tpu.memory_space<vmem>>, vector<1x128xf32>
    %4 = vector.broadcast %3 : vector<1x128xf32> to vector<50x128xf32>
    %5 = arith.addf %2, %4 : vector<50x128xf32>
    %6 = math.tanh %5 : vector<50x128xf32>
    %c0_5 = arith.constant 0 : index
    %c0_6 = arith.constant 0 : index
    %7 = vector.load %arg4[%c0_5, %c0_6] : memref<50x128xf32, #tpu.memory_space<vmem>>, vector<50x128xf32>
    tpu.vector_store %arg4[%c0_5, %c0_6], %6 {strides = array<i32>} : memref<50x128xf32, #tpu.memory_space<vmem>>, vector<50x128xf32>,
    return
  }
  func.func @transform_0(%arg0: i32) -> (i32, i32) {
    %c0_i32 = arith.constant 0 : i32
    %c0_i32_0 = arith.constant 0 : i32
    return %arg0, %c0_i32 : i32, i32
  }
  func.func @transform_1(%arg0: i32) -> (i32, i32) {
    %c0_i32 = arith.constant 0 : i32
    %c0_i32_0 = arith.constant 0 : i32
    %c0_i32_1 = arith.constant 0 : i32
    return %c0_i32, %c0_i32_0 : i32, i32
  }
  func.func @transform_2(%arg0: i32) -> (i32, i32) {
    %c0_i32 = arith.constant 0 : i32
    %c0_i32_0 = arith.constant 0 : i32
    %c0_i32_1 = arith.constant 0 : i32
    return %c0_i32, %c0_i32_0 : i32, i32
  }
  func.func @transform_3(%arg0: i32) -> (i32, i32) {
    %c0_i32 = arith.constant 0 : i32
    %c0_i32_0 = arith.constant 0 : i32
    return %arg0, %c0_i32 : i32, i32
  }
}

</mosaic_0001>

<bundles_post_ra>
// kernel: tpu_custom_call.1
= control target key start
LH: loop header
LB: loop body
LE: loop exit
PB: predicated region body
PF: predicated region fallthrough
CT: control target
= control target key end

     0   :  { %8 = vsyncpa [#allocation3], 0  ;;  %s495_s0 = inlined_call_operand.hbm [shape: f32[50,128], index: 0, kind: input, shape index: {}]   ;;  %s496_s1 = inlined_call_operand.hbm [shape: f32[128,128], index: 1, kind: input, shape index: {}]   ;;  %s497_s2 = inlined_call_operand.vmem [shape: f32[1,128], index: 2, kind: input, shape index: {}]   ;;  %s498_s3 = inlined_call_operand.hbm [shape: f32[50,128], index: 3, kind: output, shape index: {}]  }
   0x1   :  { %9 = vsyncpa [#allocation6], 0 }
   0x2   :  { %10 = vsyncpa [#allocation4], 0  ;;  %s401_s12 = smov [#allocation2]  }
   0x3   :  { %s16_s13 = sshll.u32 %s401_s12, 4  ;;  %s17_s13 = int_to_ptr.vmem [resolvable:$true] %s16_s13 }
   0x4   :  { %s343_s14 = scalar_lea.vmem %s17_s13, 896  ;;  %p348_p1 = scmp.lt.s32.totalorder %s17_s13, %s17_s13 }
   0x5   :  { %p344_p0 = scmp.ne.s32.totalorder %s17_s13, %s343_s14  ;;  %p349_p2 = scmp.lt.s32.totalorder %s343_s14, %s343_s14 }
   0x7   :  { %p350_p3 = por %p349_p2, %p348_p1 }
   0x9   :  { %p351_p4 = pnand %p350_p3, %p344_p0 }
   0xb   :  { %354 = shalt.err (!%p351_p4)
}
   0xc   :  { %s402_s15 = smov 128   ;;  %s403_s16 = smov 8  }
   0xd   :  { %22 = dma.hbm_to_vmem [thread:$0]  %s495_s0, 896, %s17_s13, [#allocation3], %s402_s15, %s402_s15, %s403_s16  }
   0xe   :  { %s404_s19 = smov [#allocation5]  }
   0xf   :  { %s28_s20 = sshll.u32 %s404_s19, 4  ;;  %s29_s20 = int_to_ptr.vmem [resolvable:$true] %s28_s20 }
  0x10   :  { %s363_s21 = scalar_lea.vmem %s29_s20, 2048  ;;  %p368_p6 = scmp.lt.s32.totalorder %s29_s20, %s29_s20 }
  0x11   :  { %p364_p5 = scmp.ne.s32.totalorder %s29_s20, %s363_s21  ;;  %p369_p7 = scmp.lt.s32.totalorder %s363_s21, %s363_s21 }
  0x13   :  { %p370_p8 = por %p369_p7, %p368_p6 }
  0x15   :  { %p371_p9 = pnand %p370_p8, %p364_p5 }
  0x17   :  { %374 = shalt.err (!%p371_p9)
}
  0x18   :  { %34 = dma.hbm_to_vmem [thread:$0]  %s496_s1, 2048, %s29_s20, [#allocation6], %s402_s15, %s402_s15, %s403_s16  }
  0x19   :  { %395 = dma.done.wait [#allocation3], 896  }
  0x1a   :  { %396 = vsyncadd [#allocation3], 4294966400 }
  0x1b   :  { %397 = dma.done.wait [#allocation6], 2048  }
  0x1c   :  { %398 = vsyncadd [#allocation6], 4294965248  ;;  %v405_v0 = vmov 0.0   ;;  %vm406_vm0 = vmmov 0   ;;  %v65_v1 = vld [vmem:[#allocation5 + $0x78] sm:$0xff]  ;;  %v64_v2 = vld [vmem:[#allocation5 + $0x70] sm:$0xff] }
  0x1d   :  { %229 = vmatprep.subr.mxu0 %v405_v0  ;;  %282 = vmatprep.subr.mxu1 %v405_v0  ;;  %v63_v3 = vld [vmem:[#allocation5 + $0x68] sm:$0xff]  ;;  %v62_v4 = vld [vmem:[#allocation5 + $0x60] sm:$0xff]  ;;  %v61_v5 = vld [vmem:[#allocation5 + $0x58] sm:$0xff] }
  0x1e   :  { %261 = vmatprep.mubr.msk.f32.mxu0 %vm406_vm0, %v405_v0  ;;  %273 = vmatprep.mubr.msk.f32.mxu1 %vm406_vm0, %v405_v0  ;;  %v60_v6 = vld [vmem:[#allocation5 + $0x50] sm:$0xff]  ;;  %v59_v7 = vld [vmem:[#allocation5 + $0x48] sm:$0xff]  ;;  %v58_v8 = vld [vmem:[#allocation5 + $0x40] sm:$0xff] }
  0x1f   :  { %230 = vmatpush3.msra.mxu0 %v65_v1  ;;  %298 = vmatpush3.msra.mxu1 %v65_v1  ;;  %v57_v9 = vld [vmem:[#allocation5 + $0x38] sm:$0xff]  ;;  %v56_v10 = vld [vmem:[#allocation5 + $0x30] sm:$0xff]  ;;  %v55_v11 = vld [vmem:[#allocation5 + $0x28] sm:$0xff] }
  0x20   :  { %231 = vmatprep.subr.mxu0 %v405_v0  ;;  %283 = vmatprep.subr.mxu1 %v405_v0  ;;  %v54_v12 = vld [vmem:[#allocation5 + $0x20] sm:$0xff]  ;;  %v53_v13 = vld [vmem:[#allocation5 + $0x18] sm:$0xff]  ;;  %v52_v14 = vld [vmem:[#allocation5 + $0x10] sm:$0xff] }
  0x21   :  { %232 = vmatpush3.msra.mxu0 %v64_v2  ;;  %299 = vmatpush3.msra.mxu1 %v64_v2  ;;  %v51_v15 = vld [vmem:[#allocation5 + $0x8] sm:$0xff]  ;;  %v50_v16 = vld [vmem:[#allocation5] sm:$0xff]  ;;  %v44_v19 = vld [vmem:[#allocation2 + $0x8] sm:$0xff] }
  0x22   :  { %233 = vmatprep.subr.mxu0 %v405_v0  ;;  %284 = vmatprep.subr.mxu1 %v405_v0  ;;  %v43_v17 = vld [vmem:[#allocation2] sm:$0xff]  ;;  %v48_v20 = vld [vmem:[#allocation2 + $0x28] sm:$0xff]  ;;  %v45_v21 = vld [vmem:[#allocation2 + $0x10] sm:$0xff] }
  0x23   :  { %234 = vmatpush3.msra.mxu0 %v63_v3  ;;  %300 = vmatpush3.msra.mxu1 %v63_v3  ;;  %v47_v18 = vld [vmem:[#allocation2 + $0x20] sm:$0xff]  ;;  %v49_v22 = vld [vmem:[#allocation2 + $0x30] sm:$0x3]  ;;  %v46_v23 = vld [vmem:[#allocation2 + $0x18] sm:$0xff] }
  0x24   :  { %235 = vmatprep.subr.mxu0 %v405_v0  ;;  %285 = vmatprep.subr.mxu1 %v405_v0  ;;  %v205_v24 = vld [vmem:[%s497_s2] ss:$0 sm:$0xff]  ;;  %s407_s2 = smov [#allocation7]  }
  0x25   :  { %236 = vmatpush3.msra.mxu0 %v62_v4  ;;  %301 = vmatpush3.msra.mxu1 %v62_v4  ;;  %s192_s24 = sshll.u32 %s407_s2, 4  ;;  %s193_s24 = int_to_ptr.vmem [resolvable:$true] %s192_s24 }
  0x26   :  { %237 = vmatprep.subr.mxu0 %v405_v0  ;;  %286 = vmatprep.subr.mxu1 %v405_v0  ;;  %s375_s25 = scalar_lea.vmem %s193_s24, 896  ;;  %p380_p11 = scmp.lt.s32.totalorder %s193_s24, %s193_s24 }
  0x27   :  { %238 = vmatpush3.msra.mxu0 %v61_v5  ;;  %302 = vmatpush3.msra.mxu1 %v61_v5  ;;  %p376_p10 = scmp.ne.s32.totalorder %s193_s24, %s375_s25  ;;  %p381_p12 = scmp.lt.s32.totalorder %s375_s25, %s375_s25 }
  0x28   :  { %239 = vmatprep.subr.mxu0 %v405_v0  ;;  %287 = vmatprep.subr.mxu1 %v405_v0 }
  0x29   :  { %240 = vmatpush3.msra.mxu0 %v60_v6  ;;  %303 = vmatpush3.msra.mxu1 %v60_v6  ;;  %p382_p13 = por %p381_p12, %p380_p11 }
  0x2a   :  { %241 = vmatprep.subr.mxu0 %v405_v0  ;;  %288 = vmatprep.subr.mxu1 %v405_v0 }
  0x2b   :  { %242 = vmatpush3.msra.mxu0 %v59_v7  ;;  %304 = vmatpush3.msra.mxu1 %v59_v7  ;;  %p383_p0 = pnand %p382_p13, %p376_p10 }
  0x2c   :  { %243 = vmatprep.subr.mxu0 %v405_v0  ;;  %289 = vmatprep.subr.mxu1 %v405_v0 }
  0x2d   :  { %244 = vmatpush3.msra.mxu0 %v58_v8  ;;  %305 = vmatpush3.msra.mxu1 %v58_v8 }
  0x2e   :  { %245 = vmatprep.subr.mxu0 %v405_v0  ;;  %290 = vmatprep.subr.mxu1 %v405_v0 }
  0x2f   :  { %246 = vmatpush3.msra.mxu0 %v57_v9  ;;  %306 = vmatpush3.msra.mxu1 %v57_v9 }
  0x30   :  { %247 = vmatprep.subr.mxu0 %v405_v0  ;;  %291 = vmatprep.subr.mxu1 %v405_v0 }
  0x31   :  { %248 = vmatpush3.msra.mxu0 %v56_v10  ;;  %307 = vmatpush3.msra.mxu1 %v56_v10 }
  0x32   :  { %249 = vmatprep.subr.mxu0 %v405_v0  ;;  %292 = vmatprep.subr.mxu1 %v405_v0 }
  0x33   :  { %250 = vmatpush3.msra.mxu0 %v55_v11  ;;  %308 = vmatpush3.msra.mxu1 %v55_v11 }
  0x34   :  { %251 = vmatprep.subr.mxu0 %v405_v0  ;;  %293 = vmatprep.subr.mxu1 %v405_v0 }
  0x35   :  { %252 = vmatpush3.msra.mxu0 %v54_v12  ;;  %309 = vmatpush3.msra.mxu1 %v54_v12 }
  0x36   :  { %253 = vmatprep.subr.mxu0 %v405_v0  ;;  %294 = vmatprep.subr.mxu1 %v405_v0 }
  0x37   :  { %254 = vmatpush3.msra.mxu0 %v53_v13  ;;  %310 = vmatpush3.msra.mxu1 %v53_v13 }
  0x38   :  { %255 = vmatprep.subr.mxu0 %v405_v0  ;;  %295 = vmatprep.subr.mxu1 %v405_v0 }
  0x39   :  { %256 = vmatpush3.msra.mxu0 %v52_v14  ;;  %311 = vmatpush3.msra.mxu1 %v52_v14 }
  0x3a   :  { %257 = vmatprep.subr.mxu0 %v405_v0  ;;  %296 = vmatprep.subr.mxu1 %v405_v0 }
  0x3b   :  { %258 = vmatpush3.msra.mxu0 %v51_v15  ;;  %312 = vmatpush3.msra.mxu1 %v51_v15 }
  0x3c   :  { %259 = vmatprep.subr.mxu0 %v405_v0  ;;  %297 = vmatprep.subr.mxu1 %v405_v0 }
  0x3d   :  { %260 = vmatpush3.msra.mxu0 %v50_v16  ;;  %313 = vmatpush3.msra.mxu1 %v50_v16 }
  0x3e   :  { %262 = vmatmul.mubr.f32.vlgmr.msra.gmra.mxu0 %v43_v17  ;;  %274 = vmatmul.mubr.f32.vlgmr.msra.gmra.mxu1 %v47_v18 }
  0x3f   :  { %264 = vmatprep.mubr.msk.f32.mxu0 %vm406_vm0, %v405_v0  ;;  %276 = vmatprep.mubr.msk.f32.mxu1 %vm406_vm0, %v405_v0 }
  0x42   :  { %265 = vmatmul.mubr.f32.gmra.mxu0 %v44_v19  ;;  %277 = vmatmul.mubr.f32.gmra.mxu1 %v48_v20 }
  0x43   :  { %267 = vmatprep.mubr.msk.f32.mxu0 %vm406_vm0, %v405_v0  ;;  %279 = vmatprep.mubr.msk.f32.mxu1 %vm406_vm0, %v405_v0 }
  0x46   :  { %268 = vmatmul.mubr.f32.gmra.mxu0 %v45_v21  ;;  %280 = vmatmul.mubr.f32.gmra.mxu1 %v49_v22 }
  0x47   :  { %270 = vmatprep.mubr.msk.f32.mxu0 %vm406_vm0, %v405_v0 }
  0x4a   :  { %271 = vmatmul.mubr.f32.gmra.mxu0 %v46_v23 }
  0xfe   :  { %v139_v25 = vpop.f32.mrf.mxu0  ;;  %v159_v26 = vpop.f32.mrf.mxu1 }
  0xff   :  { %v140_v27 = vadd.f32 %v205_v24, %v139_v25  ;;  %v160_v28 = vadd.f32 %v205_v24, %v159_v26 }
 0x100   :  { %v263_v29 = vpop.f32.mrf.mxu0  ;;  %v275_v30 = vpop.f32.mrf.mxu1 }
 0x101   :  { %321 = vtanh.f32 %v140_v27 }
 0x102   :  { %323 = vtanh.f32 %v160_v28  ;;  %v144_v31 = vpop.f32.mrf.mxu0  ;;  %v164_v32 = vpop.f32.mrf.mxu1 }
 0x103   :  { %v145_v33 = vadd.f32 %v205_v24, %v144_v31  ;;  %v165_v34 = vadd.f32 %v205_v24, %v164_v32 }
 0x104   :  { %v266_v35 = vpop.f32.mrf.mxu0  ;;  %v278_v36 = vpop.f32.mrf.mxu1 }
 0x105   :  { %325 = vtanh.f32 %v145_v33 }
 0x106   :  { %327 = vtanh.f32 %v165_v34  ;;  %v149_v37 = vpop.f32.mrf.mxu0  ;;  %v169_v38 = vpop.f32.mrf.mxu1 }
 0x107   :  { %v150_v39 = vadd.f32 %v205_v24, %v149_v37  ;;  %v170_v40 = vadd.f32 %v205_v24, %v169_v38 }
 0x108   :  { %v269_v41 = vpop.f32.mrf.mxu0  ;;  %v281_v42 = vpop.f32.mrf.mxu1 }
 0x109   :  { %329 = vtanh.f32 %v150_v39 }
 0x10a   :  { %331 = vtanh.f32 %v170_v40  ;;  %v154_v43 = vpop.f32.mrf.mxu0 }
 0x10b   :  { %v155_v44 = vadd.f32 %v205_v24, %v154_v43 }
 0x10c   :  { %v272_v45 = vpop.f32.mrf.mxu0 }
 0x10d   :  { %333 = vtanh.f32 %v155_v44 }
 0x10e   :  { %v322_v46 = vpop.eup %321 }
 0x10f   :  { %v324_v47 = vpop.eup %323  ;;  %180 = vst [vmem:[#allocation7] sm:$0xff] %v322_v46 }
 0x110   :  { %184 = vst [vmem:[#allocation7 + $0x20] sm:$0xff] %v324_v47 }
 0x112   :  { %v326_v48 = vpop.eup %325 }
 0x113   :  { %v328_v49 = vpop.eup %327  ;;  %181 = vst [vmem:[#allocation7 + $0x8] sm:$0xff] %v326_v48 }
 0x114   :  { %185 = vst [vmem:[#allocation7 + $0x28] sm:$0xff] %v328_v49 }
 0x116   :  { %v330_v50 = vpop.eup %329 }
 0x117   :  { %v332_v51 = vpop.eup %331  ;;  %182 = vst [vmem:[#allocation7 + $0x10] sm:$0xff] %v330_v50 }
 0x118   :  { %186 = vst [vmem:[#allocation7 + $0x30] sm:$0x3] %v332_v51 }
 0x11a   :  { %v334_v52 = vpop.eup %333 }
 0x11b   :  { %183 = vst [vmem:[#allocation7 + $0x18] sm:$0xff] %v334_v52 }
 0x11c   :  { %386 = shalt.err (!%p383_p0)
}
 0x11d   :  { %198 = dma.vmem_to_hbm [thread:$0]  %s193_s24, 896, %s498_s3, [#allocation4], %s402_s15, %s402_s15, %s403_s16  }
 0x11e   :  { %399 = dma.done.wait [#allocation4], 896  }
 0x11f   :  { %400 = vsyncadd [#allocation4], 4294966400 }
 0x120   :  { %202 = vsyncpa [#allocation3], 1 }
 0x121   :  { %203 = vsyncpa [#allocation6], 1 }
 0x122   :  { %204 = vsyncpa [#allocation4], 1 }

</bundles_post_ra>
